<compile_context>
chip_gen: v7x
topology: tpu7x:2x2x1
jax: 0.10.0
libtpu: 0.0.40
codegen_flags: <defaults>
</compile_context>

<pallas_src>
import functools

import jax
import jax.numpy as jnp
from jax.experimental import pallas as pl
from jax.experimental.pallas import tpu as pltpu

_LANE = 128
_SUBLANE = 8
_MAX_BLOCK_ROWS = 1024  # 1024 x 128 f32 = 512 KiB per array per block


def _tile_config(n):
    """Return (padded_rows, block_rows) for an N-element feature vector."""
    rows = -(-n // _LANE)                       # ceil(n / 128)
    rows = -(-rows // _SUBLANE) * _SUBLANE      # round up to multiple of 8
    block_rows = min(rows, _MAX_BLOCK_ROWS)
    rows = -(-rows // block_rows) * block_rows  # grid divides evenly
    return rows, block_rows


def _deeppoly_relu_kernel(lower_ref, upper_ref, alpha_ref,
                          lb_ref, ub_ref, ubias_ref, lw_ref, uw_ref):
    lower = lower_ref[...]
    upper = upper_ref[...]
    sig_alpha = jax.nn.sigmoid(alpha_ref[...])   # EUP transcendental

    zero = jnp.zeros_like(lower)
    one = jnp.ones_like(lower)

    # ReLU case masks (same semantics as the torch module)
    mask_pos = lower >= 0.0
    mask_cross = jnp.logical_and(lower < 0.0, upper > 0.0)

    # slope = upper / (upper - lower), only meaningful on crossing lanes.
    # Safe denominator avoids Inf/NaN on non-crossing lanes.
    denom = jnp.where(mask_cross, upper - lower, one)
    slope = jnp.where(mask_cross, upper / denom, zero)

    # diagonal entries of the relational weight matrices
    lower_w = jnp.where(mask_cross, sig_alpha, jnp.where(mask_pos, one, zero))
    upper_w = jnp.where(mask_cross, slope, jnp.where(mask_pos, one, zero))

    lw_ref[...] = lower_w
    uw_ref[...] = upper_w

    # upper bias (lower bias is identically zero -> built in the wrapper)
    ubias_ref[...] = jnp.where(mask_cross, -slope * lower, zero)

    # concrete bounds — identical to the torch where-chains for all 3 cases:
    #   positive: 1*lower / 1*upper
    #   crossing: sigmoid(alpha)*lower / slope*upper
    #   negative: 0 / 0
    lb_ref[...] = lower_w * lower
    ub_ref[...] = upper_w * upper


class DeepPolyReluLayerPallas:
    """JAX/Pallas re-implementation of DeepPolyReluLayer.forward."""

    def __init__(self, in_features, key):
        # in_features is (C, H, W) like the torch module
        n = in_features[0] * in_features[1] * in_features[2]
        self.n = n
        self.rows, self.block_rows = _tile_config(n)
        # deterministic synthetic parameter: 0.2 * randn(n)
        self.alpha = 0.2 * jax.random.normal(key, (n,), dtype=jnp.float32)
        self.lower_weights = None
        self.upper_weights = None
        self.lower_weights_diag = None
        self.upper_weights_diag = None
        self.lower_bias = None
        self.upper_bias = None

    @functools.partial(jax.jit, static_argnums=0)
    def _run_kernel(self, lower_flat, upper_flat, alpha_flat):
        n, rows, block_rows = self.n, self.rows, self.block_rows
        n_pad = rows * _LANE

        def to_slab(x):
            x = jnp.pad(x.astype(jnp.float32), (0, n_pad - n))
            return x.reshape(rows, _LANE)

        lower2d = to_slab(lower_flat)
        upper2d = to_slab(upper_flat)
        alpha2d = to_slab(alpha_flat)

        spec = pl.BlockSpec((block_rows, _LANE), lambda i: (i, 0))
        out_shape = jax.ShapeDtypeStruct((rows, _LANE), jnp.float32)

        lb2d, ub2d, ubias2d, lw2d, uw2d = pl.pallas_call(
            _deeppoly_relu_kernel,
            grid=(rows // block_rows,),
            in_specs=[spec, spec, spec],
            out_specs=[spec] * 5,
            out_shape=[out_shape] * 5,
            compiler_params=pltpu.CompilerParams(
                dimension_semantics=("parallel",),
                vmem_limit_bytes=32 * 1024 * 1024,
            ),
        )(lower2d, upper2d, alpha2d)

        def from_slab(x):
            return x.reshape(n_pad)[:n]

        return (from_slab(lb2d), from_slab(ub2d), from_slab(ubias2d),
                from_slab(lw2d), from_slab(uw2d))

    def forward(self, current_lower, current_upper,
                first_lower_bound=None, first_upper_bound=None, flag=None):
        # current_lower / current_upper: shape (1, N), float32
        n = self.n
        lb, ub, ubias, lw, uw = self._run_kernel(
            current_lower.reshape(-1),
            current_upper.reshape(-1),
            self.alpha)

        # Diagonal vectors are the canonical representation (use
        # w[:, None] * M instead of diag(w) @ M downstream).
        self.lower_weights_diag = lw
        self.upper_weights_diag = uw
        # Dense N x N matrices kept only for parity with the torch module.
        self.lower_weights = jnp.diag(lw)
        self.upper_weights = jnp.diag(uw)
        self.lower_bias = jnp.zeros((1, n), dtype=jnp.float32)
        self.upper_bias = ubias.reshape(1, n)
        return lb.reshape(1, n), ub.reshape(1, n)


def _reference(current_lower, current_upper, alpha):
    """Pure-JAX reference mirroring the torch forward."""
    pos = current_lower >= 0
    cross = jnp.logical_and(current_lower < 0, current_upper > 0)
    zero = jnp.zeros_like(current_lower)
    one = jnp.ones_like(current_lower)
    sig = jax.nn.sigmoid(alpha.reshape(current_lower.shape))
    slope = jnp.where(cross,
                      current_upper / (current_upper - current_lower), zero)
    lw = jnp.where(cross, sig, jnp.where(pos, one, zero))
    uw = jnp.where(cross, slope, jnp.where(pos, one, zero))
    ubias = jnp.where(cross, -slope * current_lower, zero)
    lb = jnp.where(pos, current_lower, zero)
    ub = jnp.where(pos, current_upper, zero)
    lb = jnp.where(cross, sig * current_lower, lb)
    ub = jnp.where(cross, slope * current_upper, ub)
    return lb, ub, ubias, lw, uw


if __name__ == "__main__":
    # in_features = (C, H, W) = (4, 8, 8) -> N = 256 features
    in_features = (4, 8, 8)
    n = in_features[0] * in_features[1] * in_features[2]

    key = jax.random.PRNGKey(0)
    k_alpha, k_lo, k_rng = jax.random.split(key, 3)

    layer = DeepPolyReluLayerPallas(in_features, k_alpha)

    # deterministic interval inputs with lower <= upper, mixing signs so all
    # three ReLU cases (always-positive, always-negative, crossing) occur
    lo = jax.random.normal(k_lo, (1, n), dtype=jnp.float32)
    rng = jnp.abs(jax.random.normal(k_rng, (1, n), dtype=jnp.float32))
    current_lower = lo
    current_upper = lo + rng

    lower_bound, upper_bound = layer.forward(current_lower, current_upper,
                                             None, None, True)
    jax.block_until_ready((lower_bound, upper_bound))

    # sanity check vs. pure-JAX reference
    ref_lb, ref_ub, ref_ubias, ref_lw, ref_uw = _reference(
        current_lower, current_upper, layer.alpha)
    assert jnp.allclose(lower_bound, ref_lb, atol=1e-5, rtol=1e-5)
    assert jnp.allclose(upper_bound, ref_ub, atol=1e-5, rtol=1e-5)
    assert jnp.allclose(layer.upper_bias, ref_ubias, atol=1e-5, rtol=1e-5)
    assert jnp.allclose(layer.lower_weights_diag.reshape(1, n), ref_lw,
                        atol=1e-5, rtol=1e-5)
    assert jnp.allclose(layer.upper_weights_diag.reshape(1, n), ref_uw,
                        atol=1e-5, rtol=1e-5)
    assert layer.lower_weights.shape == (n, n)
    assert layer.upper_weights.shape == (n, n)
    assert jnp.all(layer.lower_bias == 0.0)

    print("KERNEL_OK")
</pallas_src>

<mosaic_0001>
module attributes {stable_mosaic.version = 11 : i64} {
  func.func @_deeppoly_relu_kernel(%arg0: i32, %arg1: memref<8x128xf32, #tpu.memory_space<vmem>>, %arg2: memref<8x128xf32, #tpu.memory_space<vmem>>, %arg3: memref<8x128xf32, #tpu.memory_space<vmem>>, %arg4: memref<8x128xf32, #tpu.memory_space<vmem>>, %arg5: memref<8x128xf32, #tpu.memory_space<vmem>>, %arg6: memref<8x128xf32, #tpu.memory_space<vmem>>, %arg7: memref<8x128xf32, #tpu.memory_space<vmem>>, %arg8: memref<8x128xf32, #tpu.memory_space<vmem>>) attributes {dimension_semantics = [#tpu.dimension_semantics<parallel>], iteration_bounds = array<i64: 1>, scalar_prefetch = 0 : i64, scratch_operands = 0 : i64, tpu.core_type = #tpu.core_type<tc>, window_params = [{transform_indices = @transform_0, window_bounds = array<i64: 8, 128>}, {transform_indices = @transform_1, window_bounds = array<i64: 8, 128>}, {transform_indices = @transform_2, window_bounds = array<i64: 8, 128>}, {transform_indices = @transform_3, window_bounds = array<i64: 8, 128>}, {transform_indices = @transform_4, window_bounds = array<i64: 8, 128>}, {transform_indices = @transform_5, window_bounds = array<i64: 8, 128>}, {transform_indices = @transform_6, window_bounds = array<i64: 8, 128>}, {transform_indices = @transform_7, window_bounds = array<i64: 8, 128>}]} {
    %c0 = arith.constant 0 : index
    %c0_0 = arith.constant 0 : index
    %0 = vector.load %arg1[%c0, %c0_0] : memref<8x128xf32, #tpu.memory_space<vmem>>, vector<8x128xf32>
    %c0_1 = arith.constant 0 : index
    %c0_2 = arith.constant 0 : index
    %1 = vector.load %arg2[%c0_1, %c0_2] : memref<8x128xf32, #tpu.memory_space<vmem>>, vector<8x128xf32>
    %c0_3 = arith.constant 0 : index
    %c0_4 = arith.constant 0 : index
    %2 = vector.load %arg3[%c0_3, %c0_4] : memref<8x128xf32, #tpu.memory_space<vmem>>, vector<8x128xf32>
    %3 = arith.negf %2 : vector<8x128xf32>
    %4 = math.exp %3 : vector<8x128xf32>
    %cst = arith.constant 1.000000e+00 : f32
    %5 = vector.broadcast %cst : f32 to vector<8x128xf32>
    %6 = arith.addf %5, %4 : vector<8x128xf32>
    %7 = arith.divf %5, %6 : vector<8x128xf32>
    %cst_5 = arith.constant 0.000000e+00 : f32
    %8 = vector.broadcast %cst_5 : f32 to vector<8x128xf32>
    %cst_6 = arith.constant 1.000000e+00 : f32
    %9 = vector.broadcast %cst_6 : f32 to vector<8x128xf32>
    %cst_7 = arith.constant 0.000000e+00 : f32
    %10 = vector.broadcast %cst_7 : f32 to vector<8x128xf32>
    %11 = arith.cmpf oge, %0, %10 : vector<8x128xf32>
    %cst_8 = arith.constant 0.000000e+00 : f32
    %12 = vector.broadcast %cst_8 : f32 to vector<8x128xf32>
    %13 = arith.cmpf olt, %0, %12 : vector<8x128xf32>
    %cst_9 = arith.constant 0.000000e+00 : f32
    %14 = vector.broadcast %cst_9 : f32 to vector<8x128xf32>
    %15 = arith.cmpf ogt, %1, %14 : vector<8x128xf32>
    %16 = arith.andi %13, %15 : vector<8x128xi1>
    %17 = arith.subf %1, %0 : vector<8x128xf32>
    %18 = arith.select %16, %17, %9 : vector<8x128xi1>, vector<8x128xf32>
    %19 = arith.divf %1, %18 : vector<8x128xf32>
    %20 = arith.select %16, %19, %8 : vector<8x128xi1>, vector<8x128xf32>
    %21 = arith.select %11, %9, %8 : vector<8x128xi1>, vector<8x128xf32>
    %22 = arith.select %16, %7, %21 : vector<8x128xi1>, vector<8x128xf32>
    %23 = arith.select %11, %9, %8 : vector<8x128xi1>, vector<8x128xf32>
    %24 = arith.select %16, %20, %23 : vector<8x128xi1>, vector<8x128xf32>
    %c0_10 = arith.constant 0 : index
    %c0_11 = arith.constant 0 : index
    %25 = vector.load %arg7[%c0_10, %c0_11] : memref<8x128xf32, #tpu.memory_space<vmem>>, vector<8x128xf32>
    tpu.vector_store %arg7[%c0_10, %c0_11], %22 {strides = array<i32>} : memref<8x128xf32, #tpu.memory_space<vmem>>, vector<8x128xf32>,
    %c0_12 = arith.constant 0 : index
    %c0_13 = arith.constant 0 : index
    %26 = vector.load %arg8[%c0_12, %c0_13] : memref<8x128xf32, #tpu.memory_space<vmem>>, vector<8x128xf32>
    tpu.vector_store %arg8[%c0_12, %c0_13], %24 {strides = array<i32>} : memref<8x128xf32, #tpu.memory_space<vmem>>, vector<8x128xf32>,
    %cst_14 = arith.constant 0.000000e+00 : f32
    %27 = vector.broadcast %cst_14 : f32 to vector<8x128xf32>
    %28 = arith.subf %27, %20 : vector<8x128xf32>
    %29 = arith.mulf %28, %0 : vector<8x128xf32>
    %30 = arith.select %16, %29, %8 : vector<8x128xi1>, vector<8x128xf32>
    %c0_15 = arith.constant 0 : index
    %c0_16 = arith.constant 0 : index
    %31 = vector.load %arg6[%c0_15, %c0_16] : memref<8x128xf32, #tpu.memory_space<vmem>>, vector<8x128xf32>
    tpu.vector_store %arg6[%c0_15, %c0_16], %30 {strides = array<i32>} : memref<8x128xf32, #tpu.memory_space<vmem>>, vector<8x128xf32>,
    %32 = arith.mulf %22, %0 : vector<8x128xf32>
    %c0_17 = arith.constant 0 : index
    %c0_18 = arith.constant 0 : index
    %33 = vector.load %arg4[%c0_17, %c0_18] : memref<8x128xf32, #tpu.memory_space<vmem>>, vector<8x128xf32>
    tpu.vector_store %arg4[%c0_17, %c0_18], %32 {strides = array<i32>} : memref<8x128xf32, #tpu.memory_space<vmem>>, vector<8x128xf32>,
    %34 = arith.mulf %24, %1 : vector<8x128xf32>
    %c0_19 = arith.constant 0 : index
    %c0_20 = arith.constant 0 : index
    %35 = vector.load %arg5[%c0_19, %c0_20] : memref<8x128xf32, #tpu.memory_space<vmem>>, vector<8x128xf32>
    tpu.vector_store %arg5[%c0_19, %c0_20], %34 {strides = array<i32>} : memref<8x128xf32, #tpu.memory_space<vmem>>, vector<8x128xf32>,
    return
  }
  func.func @transform_0(%arg0: i32) -> (i32, i32) {
    %c0_i32 = arith.constant 0 : i32
    %c0_i32_0 = arith.constant 0 : i32
    return %arg0, %c0_i32 : i32, i32
  }
  func.func @transform_1(%arg0: i32) -> (i32, i32) {
    %c0_i32 = arith.constant 0 : i32
    %c0_i32_0 = arith.constant 0 : i32
    return %arg0, %c0_i32 : i32, i32
  }
  func.func @transform_2(%arg0: i32) -> (i32, i32) {
    %c0_i32 = arith.constant 0 : i32
    %c0_i32_0 = arith.constant 0 : i32
    return %arg0, %c0_i32 : i32, i32
  }
  func.func @transform_3(%arg0: i32) -> (i32, i32) {
    %c0_i32 = arith.constant 0 : i32
    %c0_i32_0 = arith.constant 0 : i32
    return %arg0, %c0_i32 : i32, i32
  }
  func.func @transform_4(%arg0: i32) -> (i32, i32) {
    %c0_i32 = arith.constant 0 : i32
    %c0_i32_0 = arith.constant 0 : i32
    return %arg0, %c0_i32 : i32, i32
  }
  func.func @transform_5(%arg0: i32) -> (i32, i32) {
    %c0_i32 = arith.constant 0 : i32
    %c0_i32_0 = arith.constant 0 : i32
    return %arg0, %c0_i32 : i32, i32
  }
  func.func @transform_6(%arg0: i32) -> (i32, i32) {
    %c0_i32 = arith.constant 0 : i32
    %c0_i32_0 = arith.constant 0 : i32
    return %arg0, %c0_i32 : i32, i32
  }
  func.func @transform_7(%arg0: i32) -> (i32, i32) {
    %c0_i32 = arith.constant 0 : i32
    %c0_i32_0 = arith.constant 0 : i32
    return %arg0, %c0_i32 : i32, i32
  }
}

</mosaic_0001>

<bundles_post_ra>
// kernel: _run_kernel.1
= control target key start
LH: loop header
LB: loop body
LE: loop exit
PB: predicated region body
PF: predicated region fallthrough
CT: control target
= control target key end

     0   :  { %v78_v10 = vmov 0.0   ;;  %s157_s0 = inlined_call_operand.vmem [shape: f32[8,128], index: 0, kind: input, shape index: {}]   ;;  %s158_s1 = inlined_call_operand.vmem [shape: f32[8,128], index: 1, kind: input, shape index: {}]   ;;  %s159_s2 = inlined_call_operand.vmem [shape: f32[8,128], index: 2, kind: input, shape index: {}]   ;;  %s160_s7 = inlined_call_operand.vmem [shape: f32[8,128], index: 7, kind: output, shape index: {4}]   ;;  %s161_s4 = inlined_call_operand.vmem [shape: f32[8,128], index: 4, kind: output, shape index: {1}]   ;;  %s162_s5 = inlined_call_operand.vmem [shape: f32[8,128], index: 5, kind: output, shape index: {2}]   ;;  %s163_s6 = inlined_call_operand.vmem [shape: f32[8,128], index: 6, kind: output, shape index: {3}]   ;;  %s164_s3 = inlined_call_operand.vmem [shape: f32[8,128], index: 3, kind: output, shape index: {0}]  }
   0x1   :  { %v19_v0 = vld [vmem:[%s157_s0] sm:$0xff] }
   0x2   :  { %v20_v1 = vld [vmem:[%s158_s1] sm:$0xff]  ;;  %vm29_vm0 = vcmp.lt.f32.partialorder %v19_v0, 0.0  ;;  %vm28_vm3 = vcmp.ge.f32.partialorder %v19_v0, 0.0 }
   0x3   :  { %v21_v2 = vld [vmem:[%s159_s2] sm:$0xff]  ;;  %vm30_vm1 = vcmp.gt.f32.partialorder %v20_v1, 0.0  ;;  %v32_v5 = vsub.f32 %v20_v1, %v19_v0  ;;  %v37_v11 = vsel %vm28_vm3, 1.0, %v78_v10 }
   0x4   :  { %v70_v3 = vmul.f32 -1.442695, %v21_v2  ;;  %vm128_vm2 = vmand %vm29_vm0, %vm30_vm1 }
   0x5   :  { %v33_v6 = vsel %vm128_vm2, %v32_v5, 1.0 }
   0x6   :  { %72 = vpow2.f32 %v70_v3 }
   0x7   :  { %74 = vrcp.f32 %v33_v6 }
  0x10   :  { %v73_v7 = vpop.eup %72 }
  0x11   :  { %v25_v8 = vadd.f32 1.0, %v73_v7  ;;  %v75_v9 = vpop.eup %74 }
  0x12   :  { %v35_v12 = vmul.f32 %v75_v9, %v20_v1 }
  0x13   :  { %76 = vrcp.f32 %v25_v8 }
  0x14   :  { %v39_v13 = vsel %vm128_vm2, %v35_v12, %v37_v11  ;;  %v36_v14 = vsel %vm128_vm2, %v35_v12, 0.0 }
  0x15   :  { %41 = vst [vmem:[%s160_s7] sm:$0xff] %v39_v13  ;;  %v42_v15 = vsub.f32 0.0, %v36_v14  ;;  %v48_v16 = vmul.f32 %v39_v13, %v20_v1 }
  0x17   :  { %v43_v17 = vmul.f32 %v42_v15, %v19_v0  ;;  %49 = vst [vmem:[%s161_s4] sm:$0xff] %v48_v16 }
  0x19   :  { %v44_v18 = vsel %vm128_vm2, %v43_v17, 0.0 }
  0x1a   :  { %45 = vst [vmem:[%s162_s5] sm:$0xff] %v44_v18 }
  0x1d   :  { %v77_v19 = vpop.eup %76 }
  0x1e   :  { %v38_v20 = vsel %vm128_vm2, %v77_v19, %v37_v11 }
  0x1f   :  { %40 = vst [vmem:[%s163_s6] sm:$0xff] %v38_v20  ;;  %v46_v21 = vmul.f32 %v38_v20, %v19_v0 }
  0x21   :  { %47 = vst [vmem:[%s164_s3] sm:$0xff] %v46_v21 }

</bundles_post_ra>
